<compile_context>
chip_gen: v6e
topology: v6e:2x2x1
jax: 0.10.0
libtpu: 0.0.40
codegen_flags: <defaults>
</compile_context>

<pallas_src>
import functools

import jax
import jax.numpy as jnp
from jax.experimental import pallas as pl
from jax.experimental.pallas import tpu as pltpu


def _round_up(n, m):
    return -(-n // m) * m


def _cdiv(a, b):
    return -(-a // b)


# ------------------------------ Pallas kernel --------------------------------


def _fused_encoder_ctc_kernel(x_ref, we_ref, be_ref, wd_ref, bd_ref,
                              logp_ref, logits_ref, pred_ref):
    """Fused stand-in encoder + CTC decoder head for one M-tile.

    x:(TM,F) f32, we:(F,D) bf16, be:(1,D) f32, wd:(D,V) bf16, bd:(1,V) f32.
    Writes log_softmax(logits) f32, logits bf16 and greedy argmax int32.
    """
    V = wd_ref.shape[1]

    # Stand-in encoder block: GELU(x @ W_enc + b_enc); bf16 MXU operands, f32 acc.
    x = x_ref[...].astype(jnp.bfloat16)
    h = jnp.dot(x, we_ref[...], preferred_element_type=jnp.float32)
    enc = jax.nn.gelu(h + be_ref[...])          # f32 on VPU/EUP

    # ConvASRDecoder 1x1 conv over channels == per-timestep matmul (transposes folded).
    logits = jnp.dot(enc.astype(jnp.bfloat16), wd_ref[...],
                     preferred_element_type=jnp.float32) + bd_ref[...]

    # Numerically stable log_softmax over the real (unpadded) vocab axis.
    m = jnp.max(logits, axis=-1, keepdims=True)
    ex = jnp.exp(logits - m)
    lse = jnp.log(jnp.sum(ex, axis=-1, keepdims=True)) + m

    # Greedy argmax (first index of the row max) folded into the kernel: XLU work,
    # essentially free in this store-bound kernel, and it removes a full XLA pass
    # that would otherwise re-read (M,V) log_probs just to argmax.
    iota = jax.lax.broadcasted_iota(jnp.int32, logits.shape, 1)
    pred = jnp.min(jnp.where(logits == m, iota, V), axis=-1, keepdims=True)

    logp_ref[...] = logits - lse                    # f32 (loss path)
    logits_ref[...] = logits.astype(logits_ref.dtype)   # bf16 (halves store bytes)
    pred_ref[...] = pred.astype(jnp.int32)


# --------------------------- tile / VMEM sizing --------------------------------


def _vmem_budget_bytes():
    """(tile-sizing budget, vmem_limit_bytes) per TPU generation."""
    kind = ""
    try:
        kind = jax.devices()[0].device_kind.lower()
    except Exception:
        pass
    if "v5" in kind or "v6" in kind:
        # v5e / v6e: 128 MiB physical VMEM -> large tiles amortize per-step overhead.
        return 80 * 2**20, 96 * 2**20
    # v7x (64 MiB per TensorCore) or unknown: stay conservative.
    return 40 * 2**20, 48 * 2**20


def _choose_tile_m(M, cap):
    """Pick the M-tile: prefer an exact divisor of M (zero padded rows, no output
    slice pass), sized for ~8 grid steps of pipeline depth, capped by VMEM budget."""
    if M <= 16:
        return M, M                      # block == full array dim is always legal
    cap = max(16, min(cap, (M // 16) * 16))
    target = max(16, min(cap, _round_up(_cdiv(M, 8), 16)))
    divs = [t for t in range(16, cap + 1, 16) if M % t == 0]
    good = [t for t in divs if t <= (3 * target) // 2]
    if good:
        return max(good), M
    if divs:
        return min(divs), M
    return target, _round_up(M, target)


# -------------------------------- wrapper -------------------------------------


def fused_encoder_ctc_forward(x, enc_w, enc_b, dec_w, dec_b, *, tm=None):
    """x: [B, T, F] -> (log_probs [B,T,V] f32, logits [B,T,V] bf16, greedy [B,T] i32)."""
    B, T, F = x.shape
    D = enc_w.shape[1]
    V = dec_w.shape[1]
    M = B * T

    # No-ops if prepare_params() already cast/reshaped these (the intended usage).
    we = enc_w.astype(jnp.bfloat16)
    wd = dec_w.astype(jnp.bfloat16)
    be = enc_b.reshape(1, D).astype(jnp.float32)
    bd = dec_b.reshape(1, V).astype(jnp.float32)

    budget, vmem_limit = _vmem_budget_bytes()
    # Double-buffered per-row bytes: x f32 in, log_probs f32 + logits bf16 out,
    # greedy int32 (lane-padded to 128 in VMEM); plus VMEM-resident weights (x2).
    row_bytes = 2 * (F * 4 + V * 4 + V * 2 + 128 * 4)
    w_bytes = 2 * (F * D * 2 + 8 * D * 4 + D * V * 2 + 8 * V * 4)
    tm_cap = max(16, min(2048,
                         (max(budget - w_bytes, 16 * row_bytes) // row_bytes) // 16 * 16))

    if tm is None:
        tm, Mp = _choose_tile_m(M, tm_cap)
    else:
        tm = max(8, (min(tm, tm_cap) // 8) * 8)
        Mp = _round_up(M, tm)

    x2 = x.reshape(M, F)                 # collapsing leading dims: no copy
    if Mp != M:
        x2 = jnp.pad(x2, ((0, Mp - M), (0, 0)))

    grid = (Mp // tm,)
    logp, logits, pred = pl.pallas_call(
        _fused_encoder_ctc_kernel,
        out_shape=(
            jax.ShapeDtypeStruct((Mp, V), jnp.float32),
            jax.ShapeDtypeStruct((Mp, V), jnp.bfloat16),
            jax.ShapeDtypeStruct((Mp, 1), jnp.int32),
        ),
        grid=grid,
        in_specs=[
            pl.BlockSpec((tm, F), lambda i: (i, 0)),   # activations: tiled over M
            pl.BlockSpec((F, D), lambda i: (0, 0)),    # weights: VMEM-resident
            pl.BlockSpec((1, D), lambda i: (0, 0)),
            pl.BlockSpec((D, V), lambda i: (0, 0)),
            pl.BlockSpec((1, V), lambda i: (0, 0)),
        ],
        out_specs=(
            pl.BlockSpec((tm, V), lambda i: (i, 0)),
            pl.BlockSpec((tm, V), lambda i: (i, 0)),
            pl.BlockSpec((tm, 1), lambda i: (i, 0)),
        ),
        compiler_params=pltpu.CompilerParams(
            dimension_semantics=("parallel",),          # megacore / v7x 2-TC sharding
            vmem_limit_bytes=vmem_limit,
        ),
    )(x2, we, be, wd, bd)

    if Mp != M:                                         # only when no divisor tile fits
        logp, logits, pred = logp[:M], logits[:M], pred[:M]
    return (logp.reshape(B, T, V), logits.reshape(B, T, V), pred.reshape(B, T))


@functools.partial(
    jax.jit,
    static_argnames=("global_step", "freeze_finetune_updates", "training",
                     "max_output_len", "tm"),
)
def ctc_finetune_forward(params, input_signal, input_signal_length,
                         global_step, freeze_finetune_updates,
                         training=False, max_output_len=None, tm=None):
    """Mirror of CTCFinetuneModel.forward.

    Returns (log_probs, encoded_len, greedy_predictions, logits).
    """
    ft = False if global_step is None else (freeze_finetune_updates <= global_step)

    enc_w, enc_b = params["enc_w"], params["enc_b"]
    if not ft:
        # torch.no_grad() around the frozen encoder: values unchanged, grads blocked.
        enc_w = jax.lax.stop_gradient(enc_w)
        enc_b = jax.lax.stop_gradient(enc_b)

    # encoded.transpose(1,2) + narrow(dim=2, 0, max_output_len): the transpose is
    # folded into the 1x1-conv-as-matmul; the narrow becomes a *static* time slice
    # taken before the fused kernel (stand-in encoder is per-timestep, so identical).
    x = input_signal
    if max_output_len is not None and max_output_len != x.shape[1]:
        x = x[:, :max_output_len, :]

    log_probs, logits, greedy_predictions = fused_encoder_ctc_forward(
        x, enc_w, enc_b, params["dec_w"], params["dec_b"], tm=tm)

    encoded_len = input_signal_length  # stand-in encoder: no temporal subsampling

    return log_probs, encoded_len, greedy_predictions, logits


# ------------------------------ parameter init --------------------------------


def init_params(key, feat_in, d_model, num_classes):
    """Deterministic synthetic parameters (ConvASRDecoder has num_classes+1 outputs)."""
    k1, k2, k3, k4 = jax.random.split(key, 4)
    V = num_classes + 1  # +1 for the CTC blank, as in NeMo's ConvASRDecoder
    enc_w = jax.random.normal(k1, (feat_in, d_model), jnp.float32) * (feat_in ** -0.5)
    enc_b = jax.random.normal(k2, (d_model,), jnp.float32) * 0.02
    dec_w = jax.random.normal(k3, (d_model, V), jnp.float32) * (d_model ** -0.5)
    dec_b = jax.random.normal(k4, (V,), jnp.float32) * 0.02
    return {"enc_w": enc_w, "enc_b": enc_b, "dec_w": dec_w, "dec_b": dec_b}


def prepare_params(raw):
    """One-time (outside jit) cast/reshape of the weights for the fused kernel."""
    return {
        "enc_w": raw["enc_w"].astype(jnp.bfloat16),
        "enc_b": raw["enc_b"].reshape(1, -1).astype(jnp.float32),
        "dec_w": raw["dec_w"].astype(jnp.bfloat16),
        "dec_b": raw["dec_b"].reshape(1, -1).astype(jnp.float32),
    }


# ----------------------------------- main --------------------------------------


if __name__ == "__main__":
    B, T, F, D = 2, 200, 32, 64
    NUM_CLASSES = 31  # vocab; total decoder outputs = 32 (with blank)
    V = NUM_CLASSES + 1

    key = jax.random.PRNGKey(0)
    k_x, k_p = jax.random.split(key)
    params = prepare_params(init_params(k_p, F, D, NUM_CLASSES))  # cast once, outside jit
    jax.block_until_ready(params)

    input_signal = jax.random.normal(k_x, (B, T, F), jnp.float32)
    input_signal_length = jnp.array([168, 120], dtype=jnp.int32)

    # Static (bucketed) max output length, computed once OUTSIDE the jitted forward.
    max_len = int(input_signal_length.max())

    log_probs, encoded_len, greedy, logits = ctc_finetune_forward(
        params, input_signal, input_signal_length,
        global_step=10, freeze_finetune_updates=100,   # not yet ft -> encoder frozen
        training=False, max_output_len=max_len)
    jax.block_until_ready((log_probs, encoded_len, greedy, logits))

    # Pure-JAX reference with identical math (bf16 MXU operands, f32 accumulate).
    x_sl = input_signal[:, :max_len, :]
    h_ref = jnp.dot(x_sl.astype(jnp.bfloat16).reshape(-1, F), params["enc_w"],
                    preferred_element_type=jnp.float32) + params["enc_b"]
    enc_ref = jax.nn.gelu(h_ref)
    logits_ref = (jnp.dot(enc_ref.astype(jnp.bfloat16), params["dec_w"],
                          preferred_element_type=jnp.float32)
                  + params["dec_b"]).reshape(B, max_len, V)
    logp_ref = jax.nn.log_softmax(logits_ref, axis=-1)
    pred_ref = jnp.argmax(logp_ref, axis=-1).astype(jnp.int32)

    assert log_probs.shape == (B, max_len, V) and log_probs.dtype == jnp.float32
    assert logits.shape == (B, max_len, V)
    assert greedy.shape == (B, max_len) and greedy.dtype == jnp.int32
    assert jnp.array_equal(encoded_len, input_signal_length)
    assert jnp.allclose(log_probs, logp_ref, atol=3e-3, rtol=3e-3)
    assert jnp.allclose(logits.astype(jnp.float32), logits_ref, atol=3e-2, rtol=3e-2)
    # In-kernel greedy must be self-consistent with the kernel's own log_probs ...
    assert jnp.array_equal(greedy, jnp.argmax(log_probs, axis=-1).astype(jnp.int32))
    # ... and agree with the reference except possibly for rare numerical near-ties.
    assert float(jnp.mean((greedy == pred_ref).astype(jnp.float32))) >= 0.99

    print("KERNEL_OK")
</pallas_src>

<mosaic_0001>
module attributes {stable_mosaic.version = 11 : i64} {
  func.func @_fused_encoder_ctc_kernel(%arg0: i32, %arg1: memref<48x32xf32, #tpu.memory_space<vmem>>, %arg2: memref<32x64xbf16, #tpu.memory_space<vmem>>, %arg3: memref<1x64xf32, #tpu.memory_space<vmem>>, %arg4: memref<64x32xbf16, #tpu.memory_space<vmem>>, %arg5: memref<1x32xf32, #tpu.memory_space<vmem>>, %arg6: memref<48x32xf32, #tpu.memory_space<vmem>>, %arg7: memref<48x32xbf16, #tpu.memory_space<vmem>>, %arg8: memref<48x1xi32, #tpu.memory_space<vmem>>) attributes {dimension_semantics = [#tpu.dimension_semantics<parallel>], iteration_bounds = array<i64: 7>, scalar_prefetch = 0 : i64, scratch_operands = 0 : i64, tpu.core_type = #tpu.core_type<tc>, window_params = [{transform_indices = @transform_0, window_bounds = array<i64: 48, 32>}, {pipeline_mode = #tpu.pipeline_mode<synchronous>, transform_indices = @transform_1, window_bounds = array<i64: 32, 64>}, {pipeline_mode = #tpu.pipeline_mode<synchronous>, transform_indices = @transform_2, window_bounds = array<i64: 1, 64>}, {pipeline_mode = #tpu.pipeline_mode<synchronous>, transform_indices = @transform_3, window_bounds = array<i64: 64, 32>}, {pipeline_mode = #tpu.pipeline_mode<synchronous>, transform_indices = @transform_4, window_bounds = array<i64: 1, 32>}, {transform_indices = @transform_5, window_bounds = array<i64: 48, 32>}, {transform_indices = @transform_6, window_bounds = array<i64: 48, 32>}, {transform_indices = @transform_7, window_bounds = array<i64: 48, 1>}]} {
    %c0 = arith.constant 0 : index
    %c0_0 = arith.constant 0 : index
    %0 = vector.load %arg1[%c0, %c0_0] : memref<48x32xf32, #tpu.memory_space<vmem>>, vector<48x32xf32>
    %1 = arith.truncf %0 : vector<48x32xf32> to vector<48x32xbf16>
    %c0_1 = arith.constant 0 : index
    %c0_2 = arith.constant 0 : index
    %2 = vector.load %arg2[%c0_1, %c0_2] : memref<32x64xbf16, #tpu.memory_space<vmem>>, vector<32x64xbf16>
    %cst = arith.constant dense<0.000000e+00> : vector<48x64xf32>
    %3 = tpu.matmul %1, %2, %cst {dimension_numbers = #tpu.dot_dimension_numbers<[1], [0], [0], [1], [0, 0, 1, 1], [], []>} : vector<48x32xbf16>, vector<32x64xbf16>, vector<48x64xf32> -> vector<48x64xf32>
    %c0_3 = arith.constant 0 : index
    %c0_4 = arith.constant 0 : index
    %4 = vector.load %arg3[%c0_3, %c0_4] : memref<1x64xf32, #tpu.memory_space<vmem>>, vector<1x64xf32>
    %5 = vector.broadcast %4 : vector<1x64xf32> to vector<48x64xf32>
    %6 = arith.addf %3, %5 : vector<48x64xf32>
    %7 = arith.mulf %6, %6 : vector<48x64xf32>
    %8 = arith.mulf %6, %7 : vector<48x64xf32>
    %cst_5 = arith.constant 4.471500e-02 : f32
    %9 = vector.broadcast %cst_5 : f32 to vector<48x64xf32>
    %10 = arith.mulf %9, %8 : vector<48x64xf32>
    %11 = arith.addf %6, %10 : vector<48x64xf32>
    %cst_6 = arith.constant 0.797884583 : f32
    %12 = vector.broadcast %cst_6 : f32 to vector<48x64xf32>
    %13 = arith.mulf %12, %11 : vector<48x64xf32>
    %14 = math.tanh %13 : vector<48x64xf32>
    %cst_7 = arith.constant 1.000000e+00 : f32
    %15 = vector.broadcast %cst_7 : f32 to vector<48x64xf32>
    %16 = arith.addf %15, %14 : vector<48x64xf32>
    %cst_8 = arith.constant 5.000000e-01 : f32
    %17 = vector.broadcast %cst_8 : f32 to vector<48x64xf32>
    %18 = arith.mulf %17, %16 : vector<48x64xf32>
    %19 = arith.mulf %6, %18 : vector<48x64xf32>
    %20 = arith.truncf %19 : vector<48x64xf32> to vector<48x64xbf16>
    %c0_9 = arith.constant 0 : index
    %c0_10 = arith.constant 0 : index
    %21 = vector.load %arg4[%c0_9, %c0_10] : memref<64x32xbf16, #tpu.memory_space<vmem>>, vector<64x32xbf16>
    %cst_11 = arith.constant dense<0.000000e+00> : vector<48x32xf32>
    %22 = tpu.matmul %20, %21, %cst_11 {dimension_numbers = #tpu.dot_dimension_numbers<[1], [0], [0], [1], [0, 0, 1, 1], [], []>} : vector<48x64xbf16>, vector<64x32xbf16>, vector<48x32xf32> -> vector<48x32xf32>
    %c0_12 = arith.constant 0 : index
    %c0_13 = arith.constant 0 : index
    %23 = vector.load %arg5[%c0_12, %c0_13] : memref<1x32xf32, #tpu.memory_space<vmem>>, vector<1x32xf32>
    %24 = vector.broadcast %23 : vector<1x32xf32> to vector<48x32xf32>
    %25 = arith.addf %22, %24 : vector<48x32xf32>
    %cst_14 = arith.constant dense<0xFF800000> : vector<48xf32>
    %26 = vector.multi_reduction <maximumf>, %25, %cst_14 [1] : vector<48x32xf32> to vector<48xf32>
    %27 = vector.shape_cast %26 : vector<48xf32> to vector<48x1xf32>
    %28 = vector.broadcast %27 : vector<48x1xf32> to vector<48x32xf32>
    %29 = arith.subf %25, %28 : vector<48x32xf32>
    %30 = math.exp %29 : vector<48x32xf32>
    %cst_15 = arith.constant dense<0.000000e+00> : vector<48xf32>
    %31 = vector.multi_reduction <add>, %30, %cst_15 [1] : vector<48x32xf32> to vector<48xf32>
    %32 = vector.shape_cast %31 : vector<48xf32> to vector<48x1xf32>
    %33 = math.log %32 : vector<48x1xf32>
    %34 = arith.addf %33, %27 : vector<48x1xf32>
    %35 = tpu.iota {dimensions = array<i32: 1>} : vector<48x32xi32>
    %36 = vector.broadcast %27 : vector<48x1xf32> to vector<48x32xf32>
    %37 = arith.cmpf oeq, %25, %36 : vector<48x32xf32>
    %c32_i32 = arith.constant 32 : i32
    %38 = vector.broadcast %c32_i32 : i32 to vector<48x32xi32>
    %39 = arith.select %37, %35, %38 : vector<48x32xi1>, vector<48x32xi32>
    %cst_16 = arith.constant dense<2147483647> : vector<48xi32>
    %40 = vector.multi_reduction <minsi>, %39, %cst_16 [1] : vector<48x32xi32> to vector<48xi32>
    %41 = vector.shape_cast %40 : vector<48xi32> to vector<48x1xi32>
    %42 = vector.broadcast %34 : vector<48x1xf32> to vector<48x32xf32>
    %43 = arith.subf %25, %42 : vector<48x32xf32>
    %c0_17 = arith.constant 0 : index
    %c0_18 = arith.constant 0 : index
    %44 = vector.load %arg6[%c0_17, %c0_18] : memref<48x32xf32, #tpu.memory_space<vmem>>, vector<48x32xf32>
    tpu.vector_store %arg6[%c0_17, %c0_18], %43 {strides = array<i32>} : memref<48x32xf32, #tpu.memory_space<vmem>>, vector<48x32xf32>,
    %45 = arith.truncf %25 : vector<48x32xf32> to vector<48x32xbf16>
    %c0_19 = arith.constant 0 : index
    %c0_20 = arith.constant 0 : index
    %46 = vector.load %arg7[%c0_19, %c0_20] : memref<48x32xbf16, #tpu.memory_space<vmem>>, vector<48x32xbf16>
    tpu.vector_store %arg7[%c0_19, %c0_20], %45 {strides = array<i32>} : memref<48x32xbf16, #tpu.memory_space<vmem>>, vector<48x32xbf16>,
    %c0_21 = arith.constant 0 : index
    %c0_22 = arith.constant 0 : index
    %47 = vector.load %arg8[%c0_21, %c0_22] : memref<48x1xi32, #tpu.memory_space<vmem>>, vector<48x1xi32>
    tpu.vector_store %arg8[%c0_21, %c0_22], %41 {strides = array<i32>} : memref<48x1xi32, #tpu.memory_space<vmem>>, vector<48x1xi32>,
    return
  }
  func.func @transform_0(%arg0: i32) -> (i32, i32) {
    %c0_i32 = arith.constant 0 : i32
    %c0_i32_0 = arith.constant 0 : i32
    return %arg0, %c0_i32 : i32, i32
  }
  func.func @transform_1(%arg0: i32) -> (i32, i32) {
    %c0_i32 = arith.constant 0 : i32
    %c0_i32_0 = arith.constant 0 : i32
    %c0_i32_1 = arith.constant 0 : i32
    return %c0_i32, %c0_i32_0 : i32, i32
  }
  func.func @transform_2(%arg0: i32) -> (i32, i32) {
    %c0_i32 = arith.constant 0 : i32
    %c0_i32_0 = arith.constant 0 : i32
    %c0_i32_1 = arith.constant 0 : i32
    return %c0_i32, %c0_i32_0 : i32, i32
  }
  func.func @transform_3(%arg0: i32) -> (i32, i32) {
    %c0_i32 = arith.constant 0 : i32
    %c0_i32_0 = arith.constant 0 : i32
    %c0_i32_1 = arith.constant 0 : i32
    return %c0_i32, %c0_i32_0 : i32, i32
  }
  func.func @transform_4(%arg0: i32) -> (i32, i32) {
    %c0_i32 = arith.constant 0 : i32
    %c0_i32_0 = arith.constant 0 : i32
    %c0_i32_1 = arith.constant 0 : i32
    return %c0_i32, %c0_i32_0 : i32, i32
  }
  func.func @transform_5(%arg0: i32) -> (i32, i32) {
    %c0_i32 = arith.constant 0 : i32
    %c0_i32_0 = arith.constant 0 : i32
    return %arg0, %c0_i32 : i32, i32
  }
  func.func @transform_6(%arg0: i32) -> (i32, i32) {
    %c0_i32 = arith.constant 0 : i32
    %c0_i32_0 = arith.constant 0 : i32
    return %arg0, %c0_i32 : i32, i32
  }
  func.func @transform_7(%arg0: i32) -> (i32, i32) {
    %c0_i32 = arith.constant 0 : i32
    %c0_i32_0 = arith.constant 0 : i32
    return %arg0, %c0_i32 : i32, i32
  }
}

</mosaic_0001>

<bundles_post_ra>
// kernel: ctc_finetune_forward.1
= control target key start
LH: loop header
LB: loop body
LE: loop exit
PB: predicated region body
PF: predicated region fallthrough
CT: control target
= control target key end

     0   :  { %s1109_s24 = smov 0   ;;  %s1371_s0 = inlined_call_operand.vmem [shape: f32[336,32], index: 0, kind: input, shape index: {}]   ;;  %s1372_s1 = inlined_call_operand.vmem [shape: bf16[32,64], index: 1, kind: input, shape index: {}]   ;;  %s1373_s2 = inlined_call_operand.vmem [shape: f32[1,64], index: 2, kind: input, shape index: {}]   ;;  %s1374_s3 = inlined_call_operand.vmem [shape: bf16[64,32], index: 3, kind: input, shape index: {}]   ;;  %s1375_s4 = inlined_call_operand.vmem [shape: f32[1,32], index: 4, kind: input, shape index: {}]   ;;  %s1376_s5 = inlined_call_operand.vmem [shape: f32[336,32], index: 5, kind: output, shape index: {0}]   ;;  %s1377_s6 = inlined_call_operand.vmem [shape: bf16[336,32], index: 6, kind: output, shape index: {1}]   ;;  %s1378_s7 = inlined_call_operand.vmem [shape: s32[336,1], index: 7, kind: output, shape index: {2}]  }
   0x1 LB: > { %s922_s25 = sadd.s32 4294967295, %s1065_s24   ;;  %p926_p0 = scmp.ge.s32.totalorder %s1065_s24, 1  ;;  %s1065_s24 = sphi %s1109_s24, %s18_s24  }
   0x2   : > { %p243_p1 = scmp.lt.s32.totalorder %s1065_s24, 8 }
   0x4   : > { %p244_p2 = pnand %p926_p0, %p243_p1 }
   0x5   : > { %s285_s30 = smul.u32 (!%p244_p2), 6, %s922_s25 }
   0x6   : > { %247 = sbr.rel (%p244_p2) target bundleno = 895 (0x37f), region = 40 }
   0x7   : > { %p286_p3 = scmp.lt.s32.totalorder (!%p244_p2), %s285_s30, 41 }
   0xb   : > { %v1017_v0 = vld [vmem:[%s1372_s1 + $0x8] sm:$0xff]   ;;  %v1067_v1 = vmov 0.0   ;;  %v1018_v2 = vld [vmem:[%s1372_s1] sm:$0xff]   ;;  %vm1068_vm0 = vmmov 0   ;;  %s1380_s30 = smov (!%p286_p3, %s285_s30), 41  ;;  %vm342_vm1 = vcmask 261120  }
   0xc   : > { %971 = vmatprep.subr.bf16.mxu0 %v1067_v1  ;;  %987 = vmatprep.subr.bf16.mxu1 %v1067_v1  ;;  %s1133_s8 = sshll.u32 %s1380_s30, 3  ;;  %v1019_v12 = vld [vmem:[%s1374_s3 + $0x18] sm:$0xff]   ;;  %v1020_v13 = vld [vmem:[%s1374_s3 + $0x10] sm:$0xff]   ;;  %v1021_v14 = vld [vmem:[%s1374_s3 + $0x8] sm:$0xff]   ;;  %vm505_vm2 = vcmask 523264   ;;  %s929_s25 = sshll.u32 %s1380_s30, 2 }
   0xd   : > { %972 = vmatpush3.bf16.msra.mxu0 %v1017_v0  ;;  %975 = vmatprep.mubr.msk.bf16.mxu0 %vm1068_vm0, %v1067_v1  ;;  %s289_s11 = scalar_lea.vmem %s1371_s0, %s1133_s8  ;;  %v1022_v15 = vld [vmem:[%s1374_s3] sm:$0xff]   ;;  %s1180_s28 = scalar_lea.vmem %s1377_s6, %s929_s25  ;;  %vm784_vm3 = vcmask 257024  }
   0xe   : > { %973 = vmatprep.subr.bf16.mxu0 %v1067_v1  ;;  %995 = vmatprep.mubr.msk.bf16.mxu1 %vm1068_vm0, %v1067_v1  ;;  %v310_v3 = vld [vmem:[%s289_s11] sm:$0xff]  ;;  %v311_v4 = vld [vmem:[%s289_s11 + $0x8] sm:$0xff]  ;;  %v312_v6 = vld [vmem:[%s289_s11 + $0x10] sm:$0xff]  ;;  %s295_s9 = scalar_lea.vmem %s1376_s5, %s1133_s8  ;;  %s1350_s12 = scalar_lea.vmem %s1378_s7, %s1133_s8 }
   0xf   : > { %v316_v5 = vpack.c.bf16 %v311_v4, %v310_v3  ;;  %v313_v7 = vld [vmem:[%s289_s11 + $0x18] sm:$0xff]  ;;  %v314_v9 = vld [vmem:[%s289_s11 + $0x20] sm:$0xff]  ;;  %v315_v10 = vld [vmem:[%s289_s11 + $0x28] sm:$0xff]  ;;  %988 = vmatpush3.bf16.msra.mxu1 %v1019_v12 }
  0x10   : > { %v317_v8 = vpack.c.bf16 %v313_v7, %v312_v6  ;;  %v318_v11 = vpack.c.bf16 %v315_v10, %v314_v9  ;;  %989 = vmatprep.subr.bf16.mxu1 %v1067_v1  ;;  %v931_v16 = vld [vmem:[%s1373_s2] ss:$0 sm:$0xff] }
  0x11   : > { %974 = vmatpush3.bf16.msra.mxu0 %v1018_v2 }
  0x13   : > { %990 = vmatpush3.bf16.msra.mxu1 %v1020_v13 }
  0x14   : > { %976 = vmatmul.mubr.msk.bf16.vlgmr.msra.gmra.mxu0 %vm342_vm1, %v316_v5  ;;  %991 = vmatprep.subr.bf16.mxu1 %v1067_v1 }
  0x15   : > { %979 = vmatprep.mubr.msk.bf16.mxu0 %vm1068_vm0, %v1067_v1 }
  0x17   : > { %992 = vmatpush3.bf16.msra.mxu1 %v1021_v14 }
  0x18   : > { %993 = vmatprep.subr.bf16.mxu1 %v1067_v1 }
  0x1b   : > { %994 = vmatpush3.bf16.msra.mxu1 %v1022_v15 }
  0x1c   : > { %980 = vmatmul.mubr.msk.bf16.gmra.mxu0 %vm342_vm1, %v317_v8 }
  0x1d   : > { %983 = vmatprep.mubr.msk.bf16.mxu0 %vm1068_vm0, %v1067_v1 }
  0x24   : > { %984 = vmatmul.mubr.msk.bf16.gmra.mxu0 %vm342_vm1, %v318_v11 }
  0xd4   : > { %v386_v17 = vpop.f32.mrf.mxu0 }
  0xd5   : > { %v387_v18 = vadd.f32 %v931_v16, %v386_v17 }
  0xd6   : > { %v977_v19 = vpop.f32.mrf.mxu0 }
  0xd7   : > { %v409_v20 = vmul.f32 %v387_v18, %v387_v18 }
  0xd8   : > { %v389_v21 = vpop.f32.mrf.mxu0 }
  0xd9   : > { %v415_v22 = vmul.f32 %v409_v20, %v387_v18  ;;  %v390_v23 = vadd.f32 %v931_v16, %v389_v21 }
  0xda   : > { %v978_v24 = vpop.f32.mrf.mxu0 }
  0xdb   : > { %v421_v25 = vmul.f32 0.044715, %v415_v22  ;;  %v410_v26 = vmul.f32 %v390_v23, %v390_v23 }
  0xdc   : > { %v394_v27 = vpop.f32.mrf.mxu0 }
  0xdd   : > { %v427_v28 = vadd.f32 %v421_v25, %v387_v18  ;;  %v416_v29 = vmul.f32 %v410_v26, %v390_v23  ;;  %v395_v30 = vadd.f32 %v931_v16, %v394_v27 }
  0xde   : > { %v981_v31 = vpop.f32.mrf.mxu0 }
  0xdf   : > { %v433_v32 = vmul.f32 0.7978846, %v427_v28  ;;  %v422_v33 = vmul.f32 0.044715, %v416_v29  ;;  %v411_v34 = vmul.f32 %v395_v30, %v395_v30  ;;  %v937_v29 = vld [vmem:[%s1375_s4] ss:$0 sm:$0xff] }
  0xe0   : > { %v397_v35 = vpop.f32.mrf.mxu0 }
  0xe1   : > { %1023 = vtanh.f32 %v433_v32  ;;  %v428_v36 = vadd.f32 %v422_v33, %v390_v23  ;;  %v417_v37 = vmul.f32 %v411_v34, %v395_v30  ;;  %v398_v38 = vadd.f32 %v931_v16, %v397_v35 }
  0xe2   : > { %v982_v39 = vpop.f32.mrf.mxu0 }
  0xe3   : > { %v434_v40 = vmul.f32 0.7978846, %v428_v36  ;;  %v423_v41 = vmul.f32 0.044715, %v417_v37  ;;  %v412_v42 = vmul.f32 %v398_v38, %v398_v38 }
  0xe4   : > { %v402_v43 = vpop.f32.mrf.mxu0 }
  0xe5   : > { %1025 = vtanh.f32 %v434_v40  ;;  %v429_v44 = vadd.f32 %v423_v41, %v395_v30  ;;  %v418_v45 = vmul.f32 %v412_v42, %v398_v38  ;;  %v403_v46 = vadd.f32 %v931_v16, %v402_v43 }
  0xe6   : > { %v985_v47 = vpop.f32.mrf.mxu0 }
  0xe7   : > { %v435_v48 = vmul.f32 0.7978846, %v429_v44  ;;  %v424_v49 = vmul.f32 0.044715, %v418_v45  ;;  %v413_v50 = vmul.f32 %v403_v46, %v403_v46 }
  0xe8   : > { %v405_v51 = vpop.f32.mrf.mxu0 }
  0xe9   : > { %1027 = vtanh.f32 %v435_v48  ;;  %v430_v52 = vadd.f32 %v424_v49, %v398_v38  ;;  %v419_v53 = vmul.f32 %v413_v50, %v403_v46  ;;  %v406_v54 = vadd.f32 %v931_v16, %v405_v51 }
  0xea   : > { %v986_v55 = vpop.f32.mrf.mxu0 }
  0xeb   : > { %v436_v56 = vmul.f32 0.7978846, %v430_v52  ;;  %v425_v57 = vmul.f32 0.044715, %v419_v53  ;;  %v414_v58 = vmul.f32 %v406_v54, %v406_v54 }
  0xed   : > { %1029 = vtanh.f32 %v436_v56  ;;  %v431_v59 = vadd.f32 %v425_v57, %v403_v46  ;;  %v420_v60 = vmul.f32 %v414_v58, %v406_v54 }
  0xee   : > { %v1024_v61 = vpop.eup %1023 }
  0xef   : > { %v445_v62 = vadd.f32 1.0, %v1024_v61  ;;  %v437_v63 = vmul.f32 0.7978846, %v431_v59  ;;  %v426_v0 = vmul.f32 0.044715, %v420_v60  ;;  %v644_v59 = vlaneseq }
  0xf1   : > { %1031 = vtanh.f32 %v437_v63  ;;  %v432_v2 = vadd.f32 %v426_v0, %v406_v54  ;;  %v451_v4 = vmul.f32 0.5, %v445_v62  ;;  %v645_v60 = vand.u32 127, %v644_v59 }
  0xf2   : > { %v1026_v3 = vpop.eup %1025 }
  0xf3   : > { %v446_v5 = vadd.f32 1.0, %v1026_v3  ;;  %v438_v6 = vmul.f32 0.7978846, %v432_v2  ;;  %v457_v9 = vmul.f32 %v451_v4, %v387_v18 }
  0xf5   : > { %v452_v7 = vmul.f32 0.5, %v446_v5  ;;  %1033 = vtanh.f32 %v438_v6 }
  0xf6   : > { %v1028_v8 = vpop.eup %1027 }
  0xf7   : > { %v458_v10 = vmul.f32 %v452_v7, %v390_v23  ;;  %v447_v11 = vadd.f32 1.0, %v1028_v8 }
  0xf9   : > { %v463_v12 = vpack.c.bf16 %v458_v10, %v457_v9  ;;  %v453_v14 = vmul.f32 0.5, %v447_v11 }
  0xfa   : > { %v1030_v13 = vpop.eup %1029 }
  0xfb   : > { %v448_v15 = vadd.f32 1.0, %v1030_v13  ;;  %996 = vmatmul.mubr.msk.bf16.vlgmr.msra.gmra.mxu1 %vm505_vm2, %v463_v12  ;;  %v459_v19 = vmul.f32 %v453_v14, %v395_v30 }
  0xfc   : > { %999 = vmatprep.mubr.msk.bf16.mxu1 %vm1068_vm0, %v1067_v1 }
  0xfd   : > { %v454_v16 = vmul.f32 0.5, %v448_v15 }
  0xfe   : > { %v1032_v17 = vpop.eup %1031 }
  0xff   : > { %v460_v20 = vmul.f32 %v454_v16, %v398_v38  ;;  %v449_v21 = vadd.f32 1.0, %v1032_v17 }
 0x101   : > { %v464_v22 = vpack.c.bf16 %v460_v20, %v459_v19  ;;  %v455_v23 = vmul.f32 0.5, %v449_v21 }
 0x102   : > { %v1034_v18 = vpop.eup %1033 }
 0x103   : > { %v450_v24 = vadd.f32 1.0, %v1034_v18  ;;  %1000 = vmatmul.mubr.msk.bf16.gmra.mxu1 %vm505_vm2, %v464_v22  ;;  %v461_v26 = vmul.f32 %v455_v23, %v403_v46 }
 0x104   : > { %1003 = vmatprep.mubr.msk.bf16.mxu1 %vm1068_vm0, %v1067_v1  ;;  %vm791_vm0 = vcmask 7168  }
 0x105   : > { %v456_v25 = vmul.f32 0.5, %v450_v24 }
 0x107   : > { %v462_v27 = vmul.f32 %v456_v25, %v406_v54 }
 0x109   : > { %v465_v28 = vpack.c.bf16 %v462_v27, %v461_v26 }
 0x10b   : > { %1004 = vmatmul.mubr.msk.bf16.gmra.mxu1 %vm505_vm2, %v465_v28 }
 0x1bb   : > { %v549_v30 = vpop.f32.mrf.mxu1 }
 0x1bc   : > { %v1175_v31 = vadd.f32 %v937_v29, %v549_v30 }
 0x1bd   : > { %v997_v1 = vpop.f32.mrf.mxu1 }
 0x1be   : > { %v953_v32 = vpack.c.bf16 %v1175_v31, %v1175_v31  ;;  %v572_v33 = vsel %vm342_vm1, %v1175_v31, -inf }
 0x1bf   : > { %573 = vmax.xlane.f32.xlu0 %v572_v33  ;;  %v552_v34 = vpop.f32.mrf.mxu1 }
 0x1c0   : > { %785 = vst.msk [vmem:[%s1180_s28] sm:$0xf] %vm784_vm3, %v953_v32  ;;  %v1188_v35 = vadd.f32 %v937_v29, %v552_v34 }
 0x1c1   : > { %v998_v36 = vpop.f32.mrf.mxu1 }
 0x1c2   : > { %v954_v37 = vpack.c.bf16 %v1188_v35, %v1188_v35  ;;  %v575_v38 = vsel %vm342_vm1, %v1188_v35, -inf }
 0x1c3   : > { %576 = vmax.xlane.f32.xlu0 %v575_v38  ;;  %v557_v39 = vpop.f32.mrf.mxu1 }
 0x1c4   : > { %786 = vst.msk [vmem:[%s1180_s28 + $0x4] sm:$0xf] %vm784_vm3, %v954_v37  ;;  %v1196_v40 = vadd.f32 %v937_v29, %v557_v39 }
 0x1c5   : > { %v1001_v41 = vpop.f32.mrf.mxu1 }
 0x1c6   : > { %v955_v42 = vpack.c.bf16 %v1196_v40, %v1196_v40  ;;  %v578_v43 = vsel %vm342_vm1, %v1196_v40, -inf }
 0x1c7   : > { %579 = vmax.xlane.f32.xlu1 %v578_v43  ;;  %v560_v44 = vpop.f32.mrf.mxu1 }
 0x1c8   : > { %787 = vst.msk [vmem:[%s1180_s28 + $0x8] sm:$0xf] %vm784_vm3, %v955_v42  ;;  %v1204_v45 = vadd.f32 %v937_v29, %v560_v44 }
 0x1c9   : > { %v1002_v46 = vpop.f32.mrf.mxu1 }
 0x1ca   : > { %v956_v47 = vpack.c.bf16 %v1204_v45, %v1204_v45  ;;  %v581_v48 = vsel %vm342_vm1, %v1204_v45, -inf }
 0x1cb   : > { %582 = vmax.xlane.f32.xlu1 %v581_v48  ;;  %v565_v49 = vpop.f32.mrf.mxu1 }
 0x1cc   : > { %788 = vst.msk [vmem:[%s1180_s28 + $0xc] sm:$0xf] %vm784_vm3, %v956_v47  ;;  %v1212_v50 = vadd.f32 %v937_v29, %v565_v49 }
 0x1cd   : > { %v1005_v51 = vpop.f32.mrf.mxu1 }
 0x1ce   : > { %v957_v52 = vpack.c.bf16 %v1212_v50, %v1212_v50  ;;  %v584_v53 = vsel %vm342_vm1, %v1212_v50, -inf }
 0x1cf   : > { %585 = vmax.xlane.f32.xlu0 %v584_v53  ;;  %v568_v54 = vpop.f32.mrf.mxu1 }
 0x1d0   : > { %789 = vst.msk [vmem:[%s1180_s28 + $0x10] sm:$0xf] %vm784_vm3, %v957_v52  ;;  %v1220_v55 = vadd.f32 %v937_v29, %v568_v54 }
 0x1d1   : > { %v1006_v56 = vpop.f32.mrf.mxu1 }
 0x1d2   : > { %v958_v57 = vpack.c.bf16 %v1220_v55, %v1220_v55  ;;  %v587_v58 = vsel %vm342_vm1, %v1220_v55, -inf }
 0x1d3   : > { %588 = vmax.xlane.f32.xlu1 %v587_v58 }
 0x1d4   : > { %790 = vst.msk [vmem:[%s1180_s28 + $0x14] sm:$0xf] %vm784_vm3, %v958_v57 }
 0x248   : > { %v1228_v61 = vpop.xlane.xlu0 %573 }
 0x249   : > { %vm646_vm4 = vcmp.eq.f32.partialorder %v1175_v31, %v1228_v61  ;;  %v590_v63 = vsub.f32 %v1175_v31, %v1228_v61 }
 0x24a   : > { %v652_v62 = vsel %vm646_vm4, %v645_v60, 32 }
 0x24b   : > { %v1235_v0 = vsel %vm342_vm1, %v652_v62, 2147483647  ;;  %v596_v7 = vmul.f32 1.442695, %v590_v63 }
 0x24c   : > { %v1237_v2 = vpop.xlane.xlu0 %576  ;;  %v660_v3 = vshra.s32 %v1235_v0, 16  ;;  %v659_v57 = vand.u32 65535, %v1235_v0 }
 0x24d   : > { %vm647_vm5 = vcmp.eq.f32.partialorder %v1188_v35, %v1237_v2  ;;  %v591_v4 = vsub.f32 %v1188_v35, %v1237_v2  ;;  %1035 = vpow2.f32 %v596_v7 }
 0x24e   : > { %v1244_v5 = vcvt.s32.f32 %v660_v3  ;;  %v653_v6 = vsel %vm647_vm5, %v645_v60, 32  ;;  %v661_v59 = vcvt.s32.f32 %v659_v57 }
 0x24f   : > { %v1247_v8 = vsel %vm342_vm1, %v653_v6, 2147483647  ;;  %v598_v12 = vmul.f32 1.442695, %v591_v4 }
 0x250   : > { %v1249_v9 = vpop.xlane.xlu1 %579  ;;  %663 = vmin.xlane.f32.xlu0 %v1244_v5  ;;  %v675_v10 = vshra.s32 %v1247_v8, 16 }
 0x251   : > { %v592_v11 = vsub.f32 %v1196_v40, %v1249_v9  ;;  %vm648_vm6 = vcmp.eq.f32.partialorder %v1196_v40, %v1249_v9  ;;  %1037 = vpow2.f32 %v598_v12 }
 0x252   : > { %v1257_v13 = vcvt.s32.f32 %v675_v10  ;;  %v654_v14 = vsel %vm648_vm6, %v645_v60, 32 }
 0x253   : > { %v600_v15 = vmul.f32 1.442695, %v592_v11  ;;  %v1260_v16 = vsel %vm342_vm1, %v654_v14, 2147483647 }
 0x254   : > { %v1262_v17 = vpop.xlane.xlu1 %582  ;;  %678 = vmin.xlane.f32.xlu1 %v1257_v13  ;;  %v690_v19 = vshra.s32 %v1260_v16, 16  ;;  %v689_v4 = vand.u32 65535, %v1260_v16 }
 0x255   : > { %v593_v20 = vsub.f32 %v1204_v45, %v1262_v17  ;;  %vm649_vm7 = vcmp.eq.f32.partialorder %v1204_v45, %v1262_v17  ;;  %1039 = vpow2.f32 %v600_v15 }
 0x256   : > { %v1270_v21 = vcvt.s32.f32 %v690_v19  ;;  %v655_v22 = vsel %vm649_vm7, %v645_v60, 32  ;;  %v691_v7 = vcvt.s32.f32 %v689_v4 }
 0x257   : > { %v602_v18 = vmul.f32 1.442695, %v593_v20  ;;  %v1273_v23 = vsel %vm342_vm1, %v655_v22, 2147483647 }
 0x258   : > { %693 = vmin.xlane.f32.xlu0 %v1270_v21  ;;  %v1276_v24 = vpop.xlane.xlu0 %585  ;;  %v705_v25 = vshra.s32 %v1273_v23, 16 }
 0x259   : > { %v594_v26 = vsub.f32 %v1212_v50, %v1276_v24  ;;  %vm650_vm8 = vcmp.eq.f32.partialorder %v1212_v50, %v1276_v24  ;;  %1041 = vpow2.f32 %v602_v18 }
 0x25a   : > { %v707_v27 = vcvt.s32.f32 %v705_v25  ;;  %v656_v28 = vsel %vm650_vm8, %v645_v60, 32  ;;  %v1036_v39 = vpop.eup %1035 }
 0x25b   : > { %v604_v29 = vmul.f32 1.442695, %v594_v26  ;;  %v718_v30 = vsel %vm342_vm1, %v656_v28, 2147483647  ;;  %v608_v44 = vsel %vm342_vm1, %v1036_v39, 0.0 }
 0x25c   : > { %708 = vmin.xlane.f32.xlu1 %v707_v27  ;;  %v1284_v1 = vpop.xlane.xlu1 %588  ;;  %v720_v32 = vshra.s32 %v718_v30, 16  ;;  %v719_v12 = vand.u32 65535, %v718_v30 }
 0x25d   : > { %1043 = vpow2.f32 %v604_v29  ;;  %v595_v33 = vsub.f32 %v1220_v55, %v1284_v1  ;;  %vm651_vm9 = vcmp.eq.f32.partialorder %v1220_v55, %v1284_v1 }
 0x25e   : > { %v722_v34 = vcvt.s32.f32 %v720_v32  ;;  %v657_v36 = vsel %vm651_vm9, %v645_v60, 32  ;;  %v1038_v43 = vpop.eup %1037  ;;  %v674_v60 = vand.u32 65535, %v1247_v8  ;;  %v704_v8 = vand.u32 65535, %v1273_v23 }
 0x25f   : > { %v606_v37 = vmul.f32 1.442695, %v595_v33  ;;  %v733_v38 = vsel %vm342_vm1, %v657_v36, 2147483647  ;;  %v611_v48 = vsel %vm342_vm1, %v1038_v43, 0.0  ;;  %v721_v15 = vcvt.s32.f32 %v719_v12 }
 0x260   : > { %723 = vmin.xlane.f32.xlu0 %v722_v34  ;;  %v735_v41 = vshra.s32 %v733_v38, 16  ;;  %v676_v3 = vcvt.s32.f32 %v674_v60  ;;  %v706_v11 = vcvt.s32.f32 %v704_v8  ;;  %v734_v16 = vand.u32 65535, %v733_v38 }
 0x261   : > { %1045 = vpow2.f32 %v606_v37 }
 0x262   : > { %v737_v42 = vcvt.s32.f32 %v735_v41  ;;  %v1040_v46 = vpop.eup %1039  ;;  %v736_v22 = vcvt.s32.f32 %v734_v16 }
 0x263   : > { %v614_v47 = vsel %vm342_vm1, %v1040_v46, 0.0 }
 0x264   : > { %609 = vadd.xlane.f32.xlu0 %v608_v44  ;;  %738 = vmin.xlane.f32.xlu1 %v737_v42 }
 0x266   : > { %v1042_v49 = vpop.eup %1041 }
 0x267   : > { %v617_v53 = vsel %vm342_vm1, %v1042_v49, 0.0 }
 0x268   : > { %615 = vadd.xlane.f32.xlu0 %v614_v47  ;;  %612 = vadd.xlane.f32.xlu1 %v611_v48 }
 0x26a   : > { %v1044_v51 = vpop.eup %1043 }
 0x26b   : > { %v620_v52 = vsel %vm342_vm1, %v1044_v51, 0.0 }
 0x26c   : > { %621 = vadd.xlane.f32.xlu0 %v620_v52  ;;  %618 = vadd.xlane.f32.xlu1 %v617_v53 }
 0x26e   : > { %v1046_v54 = vpop.eup %1045 }
 0x26f   : > { %v623_v56 = vsel %vm342_vm1, %v1046_v54, 0.0 }
 0x270   : > { %624 = vadd.xlane.f32.xlu1 %v623_v56 }
 0x2d9   : > { %v1298_v58 = vpop.xlane.xlu0 %663 }
 0x2da   : > { %vm665_vm10 = vcmp.eq.f32.partialorder %v1244_v5, %v1298_v58 }
 0x2db   : > { %v666_v62 = vsel %vm665_vm10, %v661_v59, inf }
 0x2dc   : > { %667 = vmin.xlane.f32.xlu0 %v666_v62 }
 0x2dd   : > { %v1303_v63 = vpop.xlane.xlu1 %678 }
 0x2de   : > { %vm680_vm11 = vcmp.eq.f32.partialorder %v1257_v13, %v1303_v63 }
 0x2df   : > { %v681_v6 = vsel %vm680_vm11, %v676_v3, inf }
 0x2e0   : > { %682 = vmin.xlane.f32.xlu1 %v681_v6 }
 0x2e1   : > { %v1308_v0 = vpop.xlane.xlu0 %693 }
 0x2e2   : > { %vm695_vm12 = vcmp.eq.f32.partialorder %v1270_v21, %v1308_v0  ;;  %v700_v54 = vcvt.f32.s32 %v1308_v0 }
 0x2e3   : > { %v696_v5 = vsel %vm695_vm12, %v691_v7, inf }
 0x2e4   : > { %697 = vmin.xlane.f32.xlu0 %v696_v5  ;;  %v701_v59 = vshll.u32 %v700_v54, 16 }
 0x2e5   : > { %v1313_v10 = vpop.xlane.xlu1 %708 }
 0x2e6   : > { %vm710_vm13 = vcmp.eq.f32.partialorder %v707_v27, %v1313_v10  ;;  %v715_v60 = vcvt.f32.s32 %v1313_v10 }
 0x2e7   : > { %v711_v14 = vsel %vm710_vm13, %v706_v11, inf }
 0x2e8   : > { %712 = vmin.xlane.f32.xlu1 %v711_v14  ;;  %v716_v4 = vshll.u32 %v715_v60, 16 }
 0x2e9   : > { %v1316_v13 = vpop.xlane.xlu0 %723 }
 0x2ea   : > { %vm725_vm14 = vcmp.eq.f32.partialorder %v722_v34, %v1316_v13  ;;  %v730_v6 = vcvt.f32.s32 %v1316_v13 }
 0x2eb   : > { %v726_v19 = vsel %vm725_vm14, %v721_v15, inf }
 0x2ec   : > { %727 = vmin.xlane.f32.xlu0 %v726_v19  ;;  %v731_v5 = vshll.u32 %v730_v6, 16 }
 0x2ed   : > { %v610_v20 = vpop.xlane.xlu0 %609  ;;  %v1319_v21 = vpop.xlane.xlu1 %738 }
 0x2ee   : > { %1047 = vlog2.f32 %v610_v20  ;;  %vm740_vm15 = vcmp.eq.f32.partialorder %v737_v42, %v1319_v21  ;;  %v745_v11 = vcvt.f32.s32 %v1319_v21 }
 0x2ef   : > { %v741_v18 = vsel %vm740_vm15, %v736_v22, inf }
 0x2f0   : > { %742 = vmin.xlane.f32.xlu1 %v741_v18  ;;  %v746_v15 = vshll.u32 %v745_v11, 16 }
 0x2f1   : > { %v616_v23 = vpop.xlane.xlu0 %615  ;;  %v613_v25 = vpop.xlane.xlu1 %612 }
 0x2f2   : > { %1049 = vlog2.f32 %v616_v23 }
 0x2f3   : > { %1051 = vlog2.f32 %v613_v25 }
 0x2f5   : > { %v622_v26 = vpop.xlane.xlu0 %621  ;;  %v619_v27 = vpop.xlane.xlu1 %618 }
 0x2f6   : > { %1053 = vlog2.f32 %v622_v26 }
 0x2f7   : > { %1055 = vlog2.f32 %v619_v27 }
 0x2f9   : > { %v625_v28 = vpop.xlane.xlu1 %624 }
 0x2fa   : > { %1057 = vlog2.f32 %v625_v28 }
 0x2fb   : > { %v1048_v29 = vpop.eup %1047 }
 0x2fc   : > { %v627_v30 = vmul.f32 0.6931472, %v1048_v29 }
 0x2fe   : > { %v638_v32 = vadd.f32 %v627_v30, %v1228_v61 }
 0x2ff   : > { %v1050_v33 = vpop.eup %1049 }
 0x300   : > { %v1052_v34 = vpop.eup %1051  ;;  %v748_v36 = vsub.f32 %v1175_v31, %v638_v32  ;;  %v631_v37 = vmul.f32 0.6931472, %v1050_v33 }
 0x301   : > { %v629_v38 = vmul.f32 0.6931472, %v1052_v34 }
 0x302   : > { %754 = vst.msk [vmem:[%s295_s9] sm:$0xff] %vm342_vm1, %v748_v36  ;;  %v640_v39 = vadd.f32 %v631_v37, %v1249_v9 }
 0x303   : > { %v1054_v41 = vpop.eup %1053  ;;  %v639_v42 = vadd.f32 %v629_v38, %v1237_v2 }
 0x304   : > { %v1056_v43 = vpop.eup %1055  ;;  %v750_v61 = vsub.f32 %v1196_v40, %v640_v39  ;;  %v635_v44 = vmul.f32 0.6931472, %v1054_v41 }
 0x305   : > { %v749_v46 = vsub.f32 %v1188_v35, %v639_v42  ;;  %v633_v47 = vmul.f32 0.6931472, %v1056_v43 }
 0x306   : > { %756 = vst.msk [vmem:[%s295_s9 + $0x10] sm:$0xff] %vm342_vm1, %v750_v61  ;;  %v642_v31 = vadd.f32 %v635_v44, %v1276_v24  ;;  %v670_v24 = vcvt.f32.s32 %v1298_v58 }
 0x307   : > { %v1058_v48 = vpop.eup %1057  ;;  %755 = vst.msk [vmem:[%s295_s9 + $0x8] sm:$0xff] %vm342_vm1, %v749_v46  ;;  %v641_v9 = vadd.f32 %v633_v47, %v1262_v17  ;;  %v685_v17 = vcvt.f32.s32 %v1303_v63 }
 0x308   : > { %v752_v49 = vsub.f32 %v1212_v50, %v642_v31  ;;  %v637_v2 = vmul.f32 0.6931472, %v1058_v48  ;;  %v671_v53 = vshll.u32 %v670_v24, 16 }
 0x309   : > { %v751_v51 = vsub.f32 %v1204_v45, %v641_v9 }
 0x30a   : > { %758 = vst.msk [vmem:[%s295_s9 + $0x20] sm:$0xff] %vm342_vm1, %v752_v49  ;;  %v643_v35 = vadd.f32 %v637_v2, %v1284_v1  ;;  %v686_v1 = vshll.u32 %v685_v17, 16 }
 0x30b   : > { %757 = vst.msk [vmem:[%s295_s9 + $0x18] sm:$0xff] %vm342_vm1, %v751_v51 }
 0x30c   : > { %v753_v40 = vsub.f32 %v1220_v55, %v643_v35 }
 0x30e   : > { %759 = vst.msk [vmem:[%s295_s9 + $0x28] sm:$0xff] %vm342_vm1, %v753_v40 }
 0x365   : > { %v668_v52 = vpop.xlane.xlu0 %667 }
 0x366   : > { %v669_v50 = vcvt.f32.s32 %v668_v52 }
 0x368   : > { %v672_v45 = vadd.s32 %v671_v53, %v669_v50 }
 0x369   : > { %v683_v55 = vpop.xlane.xlu1 %682 }
 0x36a   : > { %792 = vst.msk [vmem:[%s1350_s12] sm:$0xff] %vm791_vm0, %v672_v45  ;;  %v684_v56 = vcvt.f32.s32 %v683_v55 }
 0x36c   : > { %v687_v57 = vadd.s32 %v686_v1, %v684_v56 }
 0x36d   : > { %v698_v58 = vpop.xlane.xlu0 %697 }
 0x36e   : > { %793 = vst.msk [vmem:[%s1350_s12 + $0x8] sm:$0xff] %vm791_vm0, %v687_v57  ;;  %v699_v62 = vcvt.f32.s32 %v698_v58 }
 0x370   : > { %v702_v63 = vadd.s32 %v701_v59, %v699_v62 }
 0x371   : > { %v713_v3 = vpop.xlane.xlu1 %712 }
 0x372   : > { %794 = vst.msk [vmem:[%s1350_s12 + $0x10] sm:$0xff] %vm791_vm0, %v702_v63  ;;  %v714_v0 = vcvt.f32.s32 %v713_v3 }
 0x374   : > { %v717_v7 = vadd.s32 %v716_v4, %v714_v0 }
 0x375   : > { %v728_v8 = vpop.xlane.xlu0 %727 }
 0x376   : > { %795 = vst.msk [vmem:[%s1350_s12 + $0x18] sm:$0xff] %vm791_vm0, %v717_v7  ;;  %v729_v10 = vcvt.f32.s32 %v728_v8 }
 0x378   : > { %v732_v12 = vadd.s32 %v731_v5, %v729_v10 }
 0x379   : > { %v743_v14 = vpop.xlane.xlu1 %742 }
 0x37a   : > { %796 = vst.msk [vmem:[%s1350_s12 + $0x20] sm:$0xff] %vm791_vm0, %v732_v12  ;;  %v744_v16 = vcvt.f32.s32 %v743_v14 }
 0x37c   : > { %v747_v19 = vadd.s32 %v746_v15, %v744_v16 }
 0x37e   : > { %797 = vst.msk [vmem:[%s1350_s12 + $0x28] sm:$0xff] %vm791_vm0, %v747_v19 }
 0x37f PF: > { %s18_s24 = sadd.s32 1, %s1065_s24  }
 0x380   : > { %p15_p4 = scmp.ge.s32.totalorder %s18_s24, 9  }
 0x382   :  { %17 = sbr.rel (!%p15_p4) target bundleno = 1 (0x1), region = 94 }

</bundles_post_ra>
